<compile_context>
chip_gen: v5e
topology: v5e:2x2
jax: 0.10.0
libtpu: 0.0.40
codegen_flags: <defaults>
</compile_context>

<pallas_src>
import jax
import jax.numpy as jnp
from jax.experimental import pallas as pl
from jax.experimental.pallas import tpu as pltpu

INPUT_SIZE = 10
HIDDEN_SIZE = 20
BATCH = 2

LANE = 128      # f32 lane multiple
SUBLANE = 8     # f32 sublane multiple
BYTES_F32 = 4


def _round_up(n, m):
    return ((n + m - 1) // m) * m


def rnn_cell_kernel(xc_ref, w_ref, o_ref):
    # Single MXU push: xc = [x | h | 1 | pad], Wc = [Wx ; Wh ; bias ; pad].
    # Accumulate in f32, tanh in f32 (VPU/EUP f32 path works on all of
    # v5e/v6e/v7x), cast at the very end.
    z = jnp.dot(xc_ref[...], w_ref[...], preferred_element_type=jnp.float32)
    o_ref[...] = jnp.tanh(z).astype(o_ref.dtype)


def prepare_params(weight, bias, input_size, hidden_size):
    """One-time parameter prep (hoisted out of the per-step path).

    weight: (hidden_size, input_size + hidden_size)  [PyTorch nn.Linear layout]
    bias:   (hidden_size,)

    Returns a single lane-dense combined weight Wc of shape (KP, HP) with
      rows [0, input_size)                       = Wx^T
      rows [input_size, input_size+hidden_size)  = Wh^T
      row  input_size+hidden_size                = bias   (paired with the
                                                   constant-1 column of xc)
      everything else                            = 0  (keeps the math exact)
    """
    k = input_size + hidden_size + 1        # +1 row for the folded bias
    kp = _round_up(k, LANE)
    hp = _round_up(hidden_size, LANE)

    w_c = jnp.zeros((kp, hp), dtype=weight.dtype)
    w_c = w_c.at[: input_size + hidden_size, :hidden_size].set(weight.T)
    w_c = w_c.at[input_size + hidden_size, :hidden_size].set(bias)
    return w_c


def rnn_cell(x, h, w_c):
    """x: (B, input_size), h: (B, hidden_size); w_c from prepare_params."""
    B, input_size = x.shape
    _, hidden_size = h.shape
    kp, hp = w_c.shape
    k = input_size + hidden_size + 1

    # Batch tile: as large as the MXU likes (128 rows), but never larger than
    # the (sublane-rounded) batch; pad batch to a multiple of the tile.
    bt = min(128, _round_up(B, SUBLANE))
    bp = _round_up(B, bt)

    # Combined padded input: [x | h | 1 | zeros], batch-padded rows are zero
    # except the 1-column (they compute tanh(bias) and are sliced off below).
    ones = jnp.ones((B, 1), dtype=x.dtype)
    xc = jnp.concatenate([x, h, ones], axis=-1)          # (B, k)
    xc = jnp.pad(xc, ((0, bp - B), (0, kp - k)))         # (bp, kp)

    # Right-sized VMEM request: double-buffered input/output tiles + resident
    # weight (conservatively counted twice), with 4x headroom and a small floor.
    working = (2 * bt * kp + 2 * kp * hp + 2 * bt * hp) * BYTES_F32
    vmem_limit = int(min(max(4 * working, 4 << 20), 64 << 20))

    out_p = pl.pallas_call(
        rnn_cell_kernel,
        out_shape=jax.ShapeDtypeStruct((bp, hp), x.dtype),
        grid_spec=pl.GridSpec(
            grid=(bp // bt,),
            in_specs=[
                pl.BlockSpec((bt, kp), lambda i: (i, 0)),   # xc tile
                pl.BlockSpec((kp, hp), lambda i: (0, 0)),   # Wc resident
            ],
            out_specs=pl.BlockSpec((bt, hp), lambda i: (i, 0)),
        ),
        compiler_params=pltpu.CompilerParams(
            # Batch tiles are independent; dual-TC on v7x only kicks in once
            # there are >= 2 full tiles (i.e. batch > 128).
            dimension_semantics=("parallel",),
            vmem_limit_bytes=vmem_limit,
        ),
    )(xc, w_c)

    return out_p[:B, :hidden_size]


if __name__ == "__main__":
    key = jax.random.PRNGKey(0)
    kx, kh, kw, kb = jax.random.split(key, 4)

    x = jax.random.normal(kx, (BATCH, INPUT_SIZE), dtype=jnp.float32)
    h = jax.random.normal(kh, (BATCH, HIDDEN_SIZE), dtype=jnp.float32)

    # Deterministic init matching nn.Linear(in=30, out=20) parameter shapes.
    fan_in = INPUT_SIZE + HIDDEN_SIZE
    bound = 1.0 / float(fan_in) ** 0.5
    weight = jax.random.uniform(kw, (HIDDEN_SIZE, fan_in),
                                minval=-bound, maxval=bound, dtype=jnp.float32)
    bias = jax.random.uniform(kb, (HIDDEN_SIZE,),
                              minval=-bound, maxval=bound, dtype=jnp.float32)

    # Hoisted one-time parameter prep (invariant across timesteps).
    w_c = prepare_params(weight, bias, INPUT_SIZE, HIDDEN_SIZE)

    out = rnn_cell(x, h, w_c)
    out = jax.block_until_ready(out)

    # Pure-JAX reference check (matches the PyTorch forward).
    cat = jnp.concatenate([x, h], axis=-1)
    ref = jnp.tanh(
        jnp.dot(cat, weight.T, precision=jax.lax.Precision.HIGHEST) + bias)
    assert out.shape == (BATCH, HIDDEN_SIZE)
    assert jnp.allclose(out, ref, atol=1e-4, rtol=1e-4), \
        float(jnp.max(jnp.abs(out - ref)))

    print("KERNEL_OK")
</pallas_src>

<mosaic_0001>
module attributes {stable_mosaic.version = 11 : i64} {
  func.func @rnn_cell_kernel(%arg0: i32, %arg1: memref<8x128xf32, #tpu.memory_space<vmem>>, %arg2: memref<128x128xf32, #tpu.memory_space<vmem>>, %arg3: memref<8x128xf32, #tpu.memory_space<vmem>>) attributes {dimension_semantics = [#tpu.dimension_semantics<parallel>], iteration_bounds = array<i64: 1>, scalar_prefetch = 0 : i64, scratch_operands = 0 : i64, tpu.core_type = #tpu.core_type<tc>, window_params = [{transform_indices = @transform_0, window_bounds = array<i64: 8, 128>}, {pipeline_mode = #tpu.pipeline_mode<synchronous>, transform_indices = @transform_1, window_bounds = array<i64: 128, 128>}, {transform_indices = @transform_2, window_bounds = array<i64: 8, 128>}]} {
    %c0 = arith.constant 0 : index
    %c0_0 = arith.constant 0 : index
    %0 = vector.load %arg1[%c0, %c0_0] : memref<8x128xf32, #tpu.memory_space<vmem>>, vector<8x128xf32>
    %c0_1 = arith.constant 0 : index
    %c0_2 = arith.constant 0 : index
    %1 = vector.load %arg2[%c0_1, %c0_2] : memref<128x128xf32, #tpu.memory_space<vmem>>, vector<128x128xf32>
    %cst = arith.constant dense<0.000000e+00> : vector<8x128xf32>
    %2 = tpu.matmul %0, %1, %cst {dimension_numbers = #tpu.dot_dimension_numbers<[1], [0], [0], [1], [0, 0, 1, 1], [], []>} : vector<8x128xf32>, vector<128x128xf32>, vector<8x128xf32> -> vector<8x128xf32>
    %3 = math.tanh %2 : vector<8x128xf32>
    %c0_3 = arith.constant 0 : index
    %c0_4 = arith.constant 0 : index
    %4 = vector.load %arg3[%c0_3, %c0_4] : memref<8x128xf32, #tpu.memory_space<vmem>>, vector<8x128xf32>
    tpu.vector_store %arg3[%c0_3, %c0_4], %3 {strides = array<i32>} : memref<8x128xf32, #tpu.memory_space<vmem>>, vector<8x128xf32>,
    return
  }
  func.func @transform_0(%arg0: i32) -> (i32, i32) {
    %c0_i32 = arith.constant 0 : i32
    %c0_i32_0 = arith.constant 0 : i32
    return %arg0, %c0_i32 : i32, i32
  }
  func.func @transform_1(%arg0: i32) -> (i32, i32) {
    %c0_i32 = arith.constant 0 : i32
    %c0_i32_0 = arith.constant 0 : i32
    %c0_i32_1 = arith.constant 0 : i32
    return %c0_i32, %c0_i32_0 : i32, i32
  }
  func.func @transform_2(%arg0: i32) -> (i32, i32) {
    %c0_i32 = arith.constant 0 : i32
    %c0_i32_0 = arith.constant 0 : i32
    return %arg0, %c0_i32 : i32, i32
  }
}

</mosaic_0001>

<bundles_post_ra>
// kernel: tpu_custom_call.1
= control target key start
LH: loop header
LB: loop body
LE: loop exit
PB: predicated region body
PF: predicated region fallthrough
CT: control target
= control target key end

     0   :  { %7 = vsyncpa [#allocation3], 0  ;;  %s213_s0 = inlined_call_operand.hbm [shape: f32[8,128], index: 0, kind: input, shape index: {}]   ;;  %s214_s1 = inlined_call_operand.hbm [shape: f32[128,128], index: 1, kind: input, shape index: {}]   ;;  %s215_s2 = inlined_call_operand.hbm [shape: f32[8,128], index: 2, kind: output, shape index: {}]  }
   0x1   :  { %8 = vsyncpa [#allocation6], 0 }
   0x2   :  { %9 = vsyncpa [#allocation4], 0  ;;  %s15_s11 = sshll.u32 %s213_s0, 4  ;;  %s184_s12 = smov [#allocation2]   ;;  %s16_s11 = int_to_ptr.hbm [resolvable:$true] %s15_s11 }
   0x3   :  { %s17_s13 = sshll.u32 %s184_s12, 4  ;;  %s25_s16 = sshll.u32 %s214_s1, 4  ;;  %s18_s13 = int_to_ptr.vmem [resolvable:$true] %s17_s13  ;;  %s26_s16 = int_to_ptr.hbm [resolvable:$true] %s25_s16 }
   0x4   :  { %20 = dma.hbm_to_vmem [thread:$0]  %s16_s11, 128, %s18_s13, [#allocation3]  }
   0x5   :  { %s185_s17 = smov [#allocation5]   ;;  %s186_s19 = smov 128  }
   0x6   :  { %s27_s18 = sshll.u32 %s185_s17, 4  ;;  %s187_s20 = smov 8   ;;  %s28_s18 = int_to_ptr.vmem [resolvable:$true] %s27_s18 }
   0x7   :  { %33 = dma.hbm_to_vmem [thread:$0]  %s26_s16, 2048, %s28_s18, [#allocation6], %s186_s19, %s186_s19, %s187_s20  }
   0x8   :  { %178 = dma.done.wait [#allocation3], 128  }
   0x9   :  { %179 = vsyncadd [#allocation3], 4294967168 }
   0xa   :  { %180 = dma.done.wait [#allocation6], 2048  }
   0xb   :  { %181 = vsyncadd [#allocation6], 4294965248  ;;  %v58_v0 = vld [vmem:[#allocation5 + $0x78] sm:$0xff]  ;;  %v57_v1 = vld [vmem:[#allocation5 + $0x70] sm:$0xff]  ;;  %s188_s0 = smov [#allocation7]   ;;  %s88_s23 = sshll.u32 %s215_s2, 4  ;;  %s89_s23 = int_to_ptr.hbm [resolvable:$true] %s88_s23 }
   0xc   :  { %59 = vmatpush.msra.mxu0 %v58_v0  ;;  %v56_v2 = vld [vmem:[#allocation5 + $0x68] sm:$0xff]  ;;  %v55_v3 = vld [vmem:[#allocation5 + $0x60] sm:$0xff]  ;;  %v54_v4 = vld [vmem:[#allocation5 + $0x58] sm:$0xff]  ;;  %s86_s1 = sshll.u32 %s188_s0, 4  ;;  %s87_s1 = int_to_ptr.vmem [resolvable:$true] %s86_s1 }
   0xd   :  { %v53_v5 = vld [vmem:[#allocation5 + $0x50] sm:$0xff]  ;;  %v52_v6 = vld [vmem:[#allocation5 + $0x48] sm:$0xff]  ;;  %v51_v7 = vld [vmem:[#allocation5 + $0x40] sm:$0xff] }
   0xe   :  { %60 = vmatpush.msra.mxu0 %v57_v1  ;;  %v50_v8 = vld [vmem:[#allocation5 + $0x38] sm:$0xff]  ;;  %v49_v9 = vld [vmem:[#allocation5 + $0x30] sm:$0xff]  ;;  %v48_v10 = vld [vmem:[#allocation5 + $0x28] sm:$0xff] }
   0xf   :  { %v47_v11 = vld [vmem:[#allocation5 + $0x20] sm:$0xff]  ;;  %v46_v12 = vld [vmem:[#allocation5 + $0x18] sm:$0xff]  ;;  %v45_v13 = vld [vmem:[#allocation5 + $0x10] sm:$0xff] }
  0x10   :  { %61 = vmatpush.msra.mxu0 %v56_v2  ;;  %v44_v14 = vld [vmem:[#allocation5 + $0x8] sm:$0xff]  ;;  %v43_v15 = vld [vmem:[#allocation5] sm:$0xff]  ;;  %v42_v16 = vld [vmem:[#allocation2] sm:$0xff] }
  0x12   :  { %62 = vmatpush.msra.mxu0 %v55_v3 }
  0x14   :  { %63 = vmatpush.msra.mxu0 %v54_v4 }
  0x16   :  { %64 = vmatpush.msra.mxu0 %v53_v5 }
  0x18   :  { %65 = vmatpush.msra.mxu0 %v52_v6 }
  0x1a   :  { %66 = vmatpush.msra.mxu0 %v51_v7 }
  0x1c   :  { %67 = vmatpush.msra.mxu0 %v50_v8 }
  0x1e   :  { %68 = vmatpush.msra.mxu0 %v49_v9 }
  0x20   :  { %69 = vmatpush.msra.mxu0 %v48_v10 }
  0x22   :  { %70 = vmatpush.msra.mxu0 %v47_v11 }
  0x24   :  { %71 = vmatpush.msra.mxu0 %v46_v12 }
  0x26   :  { %72 = vmatpush.msra.mxu0 %v45_v13 }
  0x28   :  { %73 = vmatpush.msra.mxu0 %v44_v14 }
  0x2a   :  { %74 = vmatpush.msra.mxu0 %v43_v15 }
  0x2b   :  { %75 = vmatmul.f32.vlgmr.msra.gmra.mxu0 %v42_v16 }
  0xa8   :  { %v76_v17 = vpop.f32.mrf.mxu0 }
  0xa9   :  { %104 = vtanh.f32 %v76_v17 }
  0xaf   :  { %v105_v18 = vpop.eup %104 }
  0xb0   :  { %80 = vst [vmem:[#allocation7] sm:$0xff] %v105_v18 }
  0xb1   :  { %91 = dma.vmem_to_hbm [thread:$0]  %s87_s1, 128, %s89_s23, [#allocation4]  }
  0xb2   :  { %182 = dma.done.wait [#allocation4], 128  }
  0xb3   :  { %183 = vsyncadd [#allocation4], 4294967168 }
  0xb4   :  { %96 = vsyncpa [#allocation3], 1 }
  0xb5   :  { %97 = vsyncpa [#allocation6], 1 }
  0xb6   :  { %98 = vsyncpa [#allocation4], 1 }

</bundles_post_ra>
